<compile_context>
chip_gen: v7x
topology: tpu7x:2x2x1
jax: 0.10.0
libtpu: 0.0.40
codegen_flags: <defaults>
</compile_context>

<pallas_src>
import functools
import math

import jax
import jax.numpy as jnp
from jax.experimental import pallas as pl
from jax.experimental.pallas import tpu as pltpu


def _mine_kernel(x_ref, y_ref, w1x_ref, w1y_ref, b1_ref, w2_ref, b2_ref,
                 loss_ref, m_acc, s_acc, sl_acc, *, n_rows, tile_n):
    pid = pl.program_id(0)
    nsteps = pl.num_programs(0)

    @pl.when(pid == 0)
    def _init():
        m_acc[0] = jnp.float32(-jnp.inf)
        s_acc[0] = jnp.float32(0.0)
        sl_acc[0] = jnp.float32(0.0)

    # Hidden layer: Linear(D, H) with w1 split into x/y halves (no concat).
    # MXU matmuls in the native input dtype with f32 accumulation, then
    # bias + ReLU on the VPU (all f32 from here on).
    h = jnp.dot(x_ref[...], w1x_ref[...], preferred_element_type=jnp.float32)
    h = h + jnp.dot(y_ref[...], w1y_ref[...], preferred_element_type=jnp.float32)
    h = jnp.maximum(h + b1_ref[...], 0.0)                          # [TN, Hp]

    # Output layer Linear(H, 1) as elementwise mul + cross-lane (XLU) reduce.
    logits = jnp.sum(h * w2_ref[...], axis=-1, keepdims=True)      # [TN, 1]
    logits = logits + b2_ref[0, 0]

    # Mask rows beyond the true N (partial last tile / oversized tile).
    row = jax.lax.broadcasted_iota(jnp.int32, logits.shape, 0) + pid * tile_n
    valid = row < n_rows
    neg_inf = jnp.float32(-jnp.inf)
    logits_m = jnp.where(valid, logits, neg_inf)

    # Streaming logsumexp + running sum of logits (scalar SMEM accumulators).
    m_old = m_acc[0]
    m_new = jnp.maximum(m_old, jnp.max(logits_m))
    s_acc[0] = s_acc[0] * jnp.exp(m_old - m_new) + jnp.sum(
        jnp.where(valid, jnp.exp(logits_m - m_new), 0.0))
    sl_acc[0] = sl_acc[0] + jnp.sum(jnp.where(valid, logits, 0.0))
    m_acc[0] = m_new

    @pl.when(pid == nsteps - 1)
    def _finalize():
        n = jnp.float32(n_rows)
        mean_logits = sl_acc[0] / n
        # log(mean(exp(logits))) = m + log(sum(exp(logits - m))) - log(N)
        log_mean_exp = m_acc[0] + jnp.log(s_acc[0]) - jnp.log(n)
        coef = jnp.float32(-math.log2(math.e))  # -np.log2(np.exp(1))
        loss_ref[0, 0] = coef * (mean_logits - log_mean_exp)


def mine_forward(x, y, w1, b1, w2_row, b2, *, tile_n=1024):
    """x:[N,Dx], y:[N,Dy]; w1:[Dx+Dy,H], b1:[1,H], w2_row:[1,H], b2:[1,1]."""
    N, Dx = x.shape
    Ny, Dy = y.shape
    assert N == Ny
    D, H = w1.shape
    assert D == Dx + Dy

    # Pad the hidden dim to a lane multiple (128): zero weight columns give
    # ReLU(0)=0 hidden units that multiply zero w2 entries -> exact no-op,
    # but the MXU output / VPU ops become lane-dense (no masked stores).
    Hp = max(128, ((H + 127) // 128) * 128)
    pad_h = Hp - H

    w1 = jnp.asarray(w1, jnp.float32)
    b1 = jnp.asarray(b1, jnp.float32).reshape(1, H)
    w2_row = jnp.asarray(w2_row, jnp.float32).reshape(1, H)
    b2 = jnp.asarray(b2, jnp.float32).reshape(1, 1)
    if pad_h:
        w1 = jnp.pad(w1, ((0, 0), (0, pad_h)))
        b1 = jnp.pad(b1, ((0, 0), (0, pad_h)))
        w2_row = jnp.pad(w2_row, ((0, 0), (0, pad_h)))

    # Split first-layer weights so x and y never need to be concatenated, and
    # cast them to the streamed input dtype so the MXU runs natively (f32 acc).
    w1x = w1[:Dx].astype(x.dtype)
    w1y = w1[Dx:].astype(y.dtype)

    # Tile over N (multiple of 8 sublanes); shrink for small N.
    tn = max(8, min(tile_n, ((N + 7) // 8) * 8))
    grid = (pl.cdiv(N, tn),)

    # VMEM budget: double-buffered input tiles + resident params + activations.
    itemsize = jnp.dtype(x.dtype).itemsize
    est = (2 * 2 * tn * (Dx + Dy) * itemsize      # streamed x/y tiles (x2 buf)
           + 4 * tn * Hp * 4                      # hidden activations headroom
           + (Dx + Dy + 2) * Hp * 4)              # resident params
    vmem_limit = int(min(max(2 * est, 8 << 20), 64 << 20))

    kernel = functools.partial(_mine_kernel, n_rows=N, tile_n=tn)

    loss = pl.pallas_call(
        kernel,
        out_shape=jax.ShapeDtypeStruct((1, 1), jnp.float32),
        grid=grid,
        in_specs=[
            pl.BlockSpec((tn, Dx), lambda i: (i, 0)),             # x tile
            pl.BlockSpec((tn, Dy), lambda i: (i, 0)),             # y tile
            pl.BlockSpec((Dx, Hp), lambda i: (0, 0)),             # w1x resident
            pl.BlockSpec((Dy, Hp), lambda i: (0, 0)),             # w1y resident
            pl.BlockSpec((1, Hp), lambda i: (0, 0)),              # b1 resident
            pl.BlockSpec((1, Hp), lambda i: (0, 0)),              # w2 row resident
            pl.BlockSpec(memory_space=pltpu.MemorySpace.SMEM),    # b2 scalar
        ],
        out_specs=pl.BlockSpec(memory_space=pltpu.MemorySpace.SMEM),
        scratch_shapes=[
            pltpu.SMEM((1,), jnp.float32),   # running max
            pltpu.SMEM((1,), jnp.float32),   # running sum of exp(logits - max)
            pltpu.SMEM((1,), jnp.float32),   # running sum of logits
        ],
        compiler_params=pltpu.CompilerParams(
            dimension_semantics=("arbitrary",),   # serial reduction over N tiles
            vmem_limit_bytes=vmem_limit,
        ),
    )(x, y, w1x, w1y, b1, w2_row, b2)
    # TODO(synk): for v7x megacore, emit per-core partial (max, sumexp, sum)
    # triples with a "parallel" N axis + tiny wrapper-side combine instead of
    # the serial SMEM accumulator.
    return loss[0, 0]


def init_params(key, data_dim, hidden_size=10):
    """Deterministic init mimicking nn.Linear (uniform ±1/sqrt(fan_in))."""
    k1, k2, k3, k4 = jax.random.split(key, 4)
    lim1 = 1.0 / math.sqrt(data_dim)
    lim2 = 1.0 / math.sqrt(hidden_size)
    w1 = jax.random.uniform(k1, (data_dim, hidden_size), jnp.float32, -lim1, lim1)
    b1 = jax.random.uniform(k2, (1, hidden_size), jnp.float32, -lim1, lim1)
    w2_row = jax.random.uniform(k3, (1, hidden_size), jnp.float32, -lim2, lim2)
    b2 = jax.random.uniform(k4, (1, 1), jnp.float32, -lim2, lim2)
    return w1, b1, w2_row, b2


if __name__ == "__main__":
    key = jax.random.PRNGKey(0)
    kx, ky, kp = jax.random.split(key, 3)

    # Small shapes; N not a multiple of the tile to exercise masking.
    N, Dx, Dy, H = 200, 16, 16, 10          # data_dim = Dx + Dy = 32
    x = jax.random.normal(kx, (N, Dx), jnp.float32)
    y = jax.random.normal(ky, (N, Dy), jnp.float32)
    w1, b1, w2_row, b2 = init_params(kp, Dx + Dy, H)

    loss = mine_forward(x, y, w1, b1, w2_row, b2, tile_n=128)  # 2 grid steps
    jax.block_until_ready(loss)

    # Pure-JAX reference check (matches the PyTorch module).
    inputs = jnp.concatenate([x, y], axis=1)
    h = jnp.maximum(inputs @ w1 + b1, 0.0)
    logits = h @ w2_row.T + b2
    ref = jnp.float32(-math.log2(math.e)) * (
        jnp.mean(logits) - jnp.log(jnp.mean(jnp.exp(logits)))
    )
    assert jnp.allclose(loss, ref, atol=2e-5, rtol=1e-4), (loss, ref)

    print("KERNEL_OK")
</pallas_src>

<mosaic_0001>
module attributes {stable_mosaic.version = 11 : i64} {
  func.func @_mine_kernel(%arg0: i32, %arg1: memref<128x16xf32, #tpu.memory_space<vmem>>, %arg2: memref<128x16xf32, #tpu.memory_space<vmem>>, %arg3: memref<16x128xf32, #tpu.memory_space<vmem>>, %arg4: memref<16x128xf32, #tpu.memory_space<vmem>>, %arg5: memref<1x128xf32, #tpu.memory_space<vmem>>, %arg6: memref<1x128xf32, #tpu.memory_space<vmem>>, %arg7: memref<1x1xf32, #tpu.memory_space<smem>>, %arg8: memref<1x1xf32, #tpu.memory_space<smem>>, %arg9: memref<1xf32, #tpu.memory_space<smem>>, %arg10: memref<1xf32, #tpu.memory_space<smem>>, %arg11: memref<1xf32, #tpu.memory_space<smem>>) attributes {dimension_semantics = [#tpu.dimension_semantics<arbitrary>], iteration_bounds = array<i64: 2>, scalar_prefetch = 0 : i64, scratch_operands = 3 : i64, tpu.core_type = #tpu.core_type<tc>, window_params = [{transform_indices = @transform_0, window_bounds = array<i64: 128, 16>}, {transform_indices = @transform_1, window_bounds = array<i64: 128, 16>}, {pipeline_mode = #tpu.pipeline_mode<synchronous>, transform_indices = @transform_2, window_bounds = array<i64: 16, 128>}, {pipeline_mode = #tpu.pipeline_mode<synchronous>, transform_indices = @transform_3, window_bounds = array<i64: 16, 128>}, {pipeline_mode = #tpu.pipeline_mode<synchronous>, transform_indices = @transform_4, window_bounds = array<i64: 1, 128>}, {pipeline_mode = #tpu.pipeline_mode<synchronous>, transform_indices = @transform_5, window_bounds = array<i64: 1, 128>}, {transform_indices = @transform_6, window_bounds = array<i64: 1, 1>}, {transform_indices = @transform_7, window_bounds = array<i64: 1, 1>}]} {
    %c0_i32 = arith.constant 0 : i32
    %0 = arith.cmpi eq, %arg0, %c0_i32 : i32
    %1 = arith.extui %0 : i1 to i32
    %c0_i32_0 = arith.constant 0 : i32
    %2 = arith.cmpi ne, %1, %c0_i32_0 : i32
    scf.if %2 {
      %cst_30 = arith.constant 0xFF800000 : f32
      %c0_31 = arith.constant 0 : index
      %65 = memref.load %arg9[%c0_31] : memref<1xf32, #tpu.memory_space<smem>>
      memref.store %cst_30, %arg9[%c0_31] : memref<1xf32, #tpu.memory_space<smem>>
      %cst_32 = arith.constant 0.000000e+00 : f32
      %c0_33 = arith.constant 0 : index
      %66 = memref.load %arg10[%c0_33] : memref<1xf32, #tpu.memory_space<smem>>
      memref.store %cst_32, %arg10[%c0_33] : memref<1xf32, #tpu.memory_space<smem>>
      %cst_34 = arith.constant 0.000000e+00 : f32
      %c0_35 = arith.constant 0 : index
      %67 = memref.load %arg11[%c0_35] : memref<1xf32, #tpu.memory_space<smem>>
      memref.store %cst_34, %arg11[%c0_35] : memref<1xf32, #tpu.memory_space<smem>>
    } else {
    }
    %c0 = arith.constant 0 : index
    %c0_1 = arith.constant 0 : index
    %3 = vector.load %arg1[%c0, %c0_1] : memref<128x16xf32, #tpu.memory_space<vmem>>, vector<128x16xf32>
    %c0_2 = arith.constant 0 : index
    %c0_3 = arith.constant 0 : index
    %4 = vector.load %arg3[%c0_2, %c0_3] : memref<16x128xf32, #tpu.memory_space<vmem>>, vector<16x128xf32>
    %cst = arith.constant dense<0.000000e+00> : vector<128x128xf32>
    %5 = tpu.matmul %3, %4, %cst {dimension_numbers = #tpu.dot_dimension_numbers<[1], [0], [0], [1], [0, 0, 1, 1], [], []>} : vector<128x16xf32>, vector<16x128xf32>, vector<128x128xf32> -> vector<128x128xf32>
    %c0_4 = arith.constant 0 : index
    %c0_5 = arith.constant 0 : index
    %6 = vector.load %arg2[%c0_4, %c0_5] : memref<128x16xf32, #tpu.memory_space<vmem>>, vector<128x16xf32>
    %c0_6 = arith.constant 0 : index
    %c0_7 = arith.constant 0 : index
    %7 = vector.load %arg4[%c0_6, %c0_7] : memref<16x128xf32, #tpu.memory_space<vmem>>, vector<16x128xf32>
    %cst_8 = arith.constant dense<0.000000e+00> : vector<128x128xf32>
    %8 = tpu.matmul %6, %7, %cst_8 {dimension_numbers = #tpu.dot_dimension_numbers<[1], [0], [0], [1], [0, 0, 1, 1], [], []>} : vector<128x16xf32>, vector<16x128xf32>, vector<128x128xf32> -> vector<128x128xf32>
    %9 = arith.addf %5, %8 : vector<128x128xf32>
    %c0_9 = arith.constant 0 : index
    %c0_10 = arith.constant 0 : index
    %10 = vector.load %arg5[%c0_9, %c0_10] : memref<1x128xf32, #tpu.memory_space<vmem>>, vector<1x128xf32>
    %11 = vector.broadcast %10 : vector<1x128xf32> to vector<128x128xf32>
    %12 = arith.addf %9, %11 : vector<128x128xf32>
    %cst_11 = arith.constant 0.000000e+00 : f32
    %13 = vector.broadcast %cst_11 : f32 to vector<128x128xf32>
    %14 = arith.maximumf %12, %13 : vector<128x128xf32>
    %c0_12 = arith.constant 0 : index
    %c0_13 = arith.constant 0 : index
    %15 = vector.load %arg6[%c0_12, %c0_13] : memref<1x128xf32, #tpu.memory_space<vmem>>, vector<1x128xf32>
    %16 = vector.broadcast %15 : vector<1x128xf32> to vector<128x128xf32>
    %17 = arith.mulf %14, %16 : vector<128x128xf32>
    %cst_14 = arith.constant dense<0.000000e+00> : vector<128xf32>
    %18 = vector.multi_reduction <add>, %17, %cst_14 [1] : vector<128x128xf32> to vector<128xf32>
    %19 = vector.shape_cast %18 : vector<128xf32> to vector<128x1xf32>
    %c0_15 = arith.constant 0 : index
    %c0_16 = arith.constant 0 : index
    %20 = memref.load %arg7[%c0_15, %c0_16] : memref<1x1xf32, #tpu.memory_space<smem>>
    %21 = vector.broadcast %20 : f32 to vector<128x1xf32>
    %22 = arith.addf %19, %21 : vector<128x1xf32>
    %23 = tpu.iota {dimensions = array<i32: 0>} : vector<128x1xi32>
    %c128_i32 = arith.constant 128 : i32
    %24 = arith.muli %arg0, %c128_i32 : i32
    %25 = vector.broadcast %24 : i32 to vector<128x1xi32>
    %26 = arith.addi %23, %25 : vector<128x1xi32>
    %c200_i32 = arith.constant 200 : i32
    %27 = vector.broadcast %c200_i32 : i32 to vector<128x1xi32>
    %28 = arith.cmpi slt, %26, %27 : vector<128x1xi32>
    %cst_17 = arith.constant 0xFF800000 : f32
    %29 = vector.broadcast %cst_17 : f32 to vector<128x1xf32>
    %30 = arith.select %28, %22, %29 : vector<128x1xi1>, vector<128x1xf32>
    %c0_18 = arith.constant 0 : index
    %31 = memref.load %arg9[%c0_18] : memref<1xf32, #tpu.memory_space<smem>>
    %32 = vector.shape_cast %30 : vector<128x1xf32> to vector<1x128x1xf32>
    %cst_19 = arith.constant dense<0xFF800000> : vector<1xf32>
    %33 = vector.multi_reduction <maximumf>, %32, %cst_19 [1, 2] : vector<1x128x1xf32> to vector<1xf32>
    %34 = vector.shape_cast %33 : vector<1xf32> to vector<1x1x1xf32>
    %35 = vector.extract %34[0, 0, 0] : f32 from vector<1x1x1xf32>
    %36 = arith.maximumf %31, %35 : f32
    %c0_20 = arith.constant 0 : index
    %37 = memref.load %arg10[%c0_20] : memref<1xf32, #tpu.memory_space<smem>>
    %38 = arith.subf %31, %36 : f32
    %39 = math.exp %38 : f32
    %40 = arith.mulf %37, %39 : f32
    %41 = vector.broadcast %36 : f32 to vector<128x1xf32>
    %42 = arith.subf %30, %41 : vector<128x1xf32>
    %43 = math.exp %42 : vector<128x1xf32>
    %cst_21 = arith.constant 0.000000e+00 : f32
    %44 = vector.broadcast %cst_21 : f32 to vector<128x1xf32>
    %45 = arith.select %28, %43, %44 : vector<128x1xi1>, vector<128x1xf32>
    %46 = vector.shape_cast %45 : vector<128x1xf32> to vector<1x128x1xf32>
    %cst_22 = arith.constant dense<0.000000e+00> : vector<1xf32>
    %47 = vector.multi_reduction <add>, %46, %cst_22 [1, 2] : vector<1x128x1xf32> to vector<1xf32>
    %48 = vector.shape_cast %47 : vector<1xf32> to vector<1x1x1xf32>
    %49 = vector.extract %48[0, 0, 0] : f32 from vector<1x1x1xf32>
    %50 = arith.addf %40, %49 : f32
    %c0_23 = arith.constant 0 : index
    %51 = memref.load %arg10[%c0_23] : memref<1xf32, #tpu.memory_space<smem>>
    memref.store %50, %arg10[%c0_23] : memref<1xf32, #tpu.memory_space<smem>>
    %c0_24 = arith.constant 0 : index
    %52 = memref.load %arg11[%c0_24] : memref<1xf32, #tpu.memory_space<smem>>
    %cst_25 = arith.constant 0.000000e+00 : f32
    %53 = vector.broadcast %cst_25 : f32 to vector<128x1xf32>
    %54 = arith.select %28, %22, %53 : vector<128x1xi1>, vector<128x1xf32>
    %55 = vector.shape_cast %54 : vector<128x1xf32> to vector<1x128x1xf32>
    %cst_26 = arith.constant dense<0.000000e+00> : vector<1xf32>
    %56 = vector.multi_reduction <add>, %55, %cst_26 [1, 2] : vector<1x128x1xf32> to vector<1xf32>
    %57 = vector.shape_cast %56 : vector<1xf32> to vector<1x1x1xf32>
    %58 = vector.extract %57[0, 0, 0] : f32 from vector<1x1x1xf32>
    %59 = arith.addf %52, %58 : f32
    %c0_27 = arith.constant 0 : index
    %60 = memref.load %arg11[%c0_27] : memref<1xf32, #tpu.memory_space<smem>>
    memref.store %59, %arg11[%c0_27] : memref<1xf32, #tpu.memory_space<smem>>
    %c0_28 = arith.constant 0 : index
    %61 = memref.load %arg9[%c0_28] : memref<1xf32, #tpu.memory_space<smem>>
    memref.store %36, %arg9[%c0_28] : memref<1xf32, #tpu.memory_space<smem>>
    %c1_i32 = arith.constant 1 : i32
    %62 = arith.cmpi eq, %arg0, %c1_i32 : i32
    %63 = arith.extui %62 : i1 to i32
    %c0_i32_29 = arith.constant 0 : i32
    %64 = arith.cmpi ne, %63, %c0_i32_29 : i32
    scf.if %64 {
      %c0_30 = arith.constant 0 : index
      %65 = memref.load %arg11[%c0_30] : memref<1xf32, #tpu.memory_space<smem>>
      %cst_31 = arith.constant 2.000000e+02 : f32
      %66 = arith.divf %65, %cst_31 : f32
      %c0_32 = arith.constant 0 : index
      %67 = memref.load %arg9[%c0_32] : memref<1xf32, #tpu.memory_space<smem>>
      %c0_33 = arith.constant 0 : index
      %68 = memref.load %arg10[%c0_33] : memref<1xf32, #tpu.memory_space<smem>>
      %69 = math.log %68 : f32
      %70 = arith.addf %67, %69 : f32
      %cst_34 = arith.constant 2.000000e+02 : f32
      %71 = math.log %cst_34 : f32
      %72 = arith.subf %70, %71 : f32
      %73 = arith.subf %66, %72 : f32
      %cst_35 = arith.constant -1.44269502 : f32
      %74 = arith.mulf %cst_35, %73 : f32
      %c0_36 = arith.constant 0 : index
      %c0_37 = arith.constant 0 : index
      %75 = memref.load %arg8[%c0_36, %c0_37] : memref<1x1xf32, #tpu.memory_space<smem>>
      memref.store %74, %arg8[%c0_36, %c0_37] : memref<1x1xf32, #tpu.memory_space<smem>>
    } else {
    }
    return
  }
  func.func @transform_0(%arg0: i32) -> (i32, i32) {
    %c0_i32 = arith.constant 0 : i32
    %c0_i32_0 = arith.constant 0 : i32
    return %arg0, %c0_i32 : i32, i32
  }
  func.func @transform_1(%arg0: i32) -> (i32, i32) {
    %c0_i32 = arith.constant 0 : i32
    %c0_i32_0 = arith.constant 0 : i32
    return %arg0, %c0_i32 : i32, i32
  }
  func.func @transform_2(%arg0: i32) -> (i32, i32) {
    %c0_i32 = arith.constant 0 : i32
    %c0_i32_0 = arith.constant 0 : i32
    %c0_i32_1 = arith.constant 0 : i32
    return %c0_i32, %c0_i32_0 : i32, i32
  }
  func.func @transform_3(%arg0: i32) -> (i32, i32) {
    %c0_i32 = arith.constant 0 : i32
    %c0_i32_0 = arith.constant 0 : i32
    %c0_i32_1 = arith.constant 0 : i32
    return %c0_i32, %c0_i32_0 : i32, i32
  }
  func.func @transform_4(%arg0: i32) -> (i32, i32) {
    %c0_i32 = arith.constant 0 : i32
    %c0_i32_0 = arith.constant 0 : i32
    %c0_i32_1 = arith.constant 0 : i32
    return %c0_i32, %c0_i32_0 : i32, i32
  }
  func.func @transform_5(%arg0: i32) -> (i32, i32) {
    %c0_i32 = arith.constant 0 : i32
    %c0_i32_0 = arith.constant 0 : i32
    %c0_i32_1 = arith.constant 0 : i32
    return %c0_i32, %c0_i32_0 : i32, i32
  }
  func.func @transform_6(%arg0: i32) -> (i32, i32) {
    %c0_i32 = arith.constant 0 : i32
    %c0_i32_0 = arith.constant 0 : i32
    %c0_i32_1 = arith.constant 0 : i32
    return %c0_i32, %c0_i32_0 : i32, i32
  }
  func.func @transform_7(%arg0: i32) -> (i32, i32) {
    %c0_i32 = arith.constant 0 : i32
    %c0_i32_0 = arith.constant 0 : i32
    %c0_i32_1 = arith.constant 0 : i32
    return %c0_i32, %c0_i32_0 : i32, i32
  }
}

</mosaic_0001>

<bundles_post_ra>
// kernel: tpu_custom_call.1
= control target key start
LH: loop header
LB: loop body
LE: loop exit
PB: predicated region body
PF: predicated region fallthrough
CT: control target
= control target key end

     0   :  { %s2021_s0 = inlined_call_operand.vmem [shape: f32[200,16], index: 0, kind: input, shape index: {}]   ;;  %s2022_s1 = inlined_call_operand.vmem [shape: f32[200,16], index: 1, kind: input, shape index: {}]   ;;  %s2023_s2 = inlined_call_operand.vmem [shape: f32[16,128], index: 2, kind: input, shape index: {}]   ;;  %s2024_s3 = inlined_call_operand.vmem [shape: f32[16,128], index: 3, kind: input, shape index: {}]   ;;  %s2025_s4 = inlined_call_operand.vmem [shape: f32[1,128], index: 4, kind: input, shape index: {}]   ;;  %s2026_s5 = inlined_call_operand.vmem [shape: f32[1,128], index: 5, kind: input, shape index: {}]   ;;  %s2027_s6 = inlined_call_operand.<no memory space> [shape: f32[1,1], index: 6, kind: input, shape index: {}]   ;;  %s2028_s7 = inlined_call_operand.hbm [shape: f32[1,1], index: 7, kind: output, shape index: {}]  }
   0x1   :  { %12 = sst [smem:[#allocation5]] %s2027_s6 }
   0x2   :  { %13 = vsyncpa [#allocation7], 0  ;;  %s1525_s26 = smov 0  }
   0x3 LB: > { %s1531_s27 = sadd.s32 4294967295, %s1477_s26   ;;  %p1224_p0 = scmp.ge.s32.totalorder %s1477_s26, 1  ;;  %s1477_s26 = sphi %s1525_s26, %s19_s26  }
   0x4   : > { %p262_p1 = scmp.lt.s32.totalorder %s1477_s26, 3 }
   0x6   : > { %p263_p2 = pnand %p1224_p0, %p262_p1 }
   0x7   : > { %v374_v0 = vld [vmem:[%s2024_s3] sm:$0xff] (!%p263_p2)  ;;  %v375_v1 = vld [vmem:[%s2024_s3 + $0x8] sm:$0xff] (!%p263_p2)  ;;  %s1225_s10 = sshll.u32 (!%p263_p2), %s1531_s27, 4  ;;  %vm376_vm0 = vcmask (!%p263_p2), 130048   ;;  %p1405_p4 = scmp.eq.s32.totalorder (!%p263_p2), %s1531_s27, 0  ;;  %vm1038_vm3 = vcmask (!%p263_p2), 7168  }
   0x8   : > { %266 = sbr.rel (%p263_p2) target bundleno = 839 (0x347), region = 48  ;;  %v356_v2 = vld [vmem:[%s2023_s2] sm:$0xff] (!%p263_p2)  ;;  %v1363_v3 = vpack.c.bf16 (!%p263_p2), %v375_v1, %v374_v0  ;;  %v357_v4 = vld [vmem:[%s2023_s2 + $0x8] sm:$0xff] (!%p263_p2)  ;;  %p307_p3 = scmp.lt.s32.totalorder (!%p263_p2), %s1225_s10, 24 }
   0x9   : > { %v1367_v5 = vpack.c.bf16 (!%p263_p2), %v357_v4, %v356_v2  ;;  %v1625_v40 = vld [vmem:[%s2025_s4] ss:$0 sm:$0xff] (!%p263_p2)  ;;  %s1479_s24 = smov (!%p263_p2), -inf   ;;  %s857_s25 = sld [smem:[#allocation5]] (!%p263_p2) }
   0xa   : > { %1364 = vmatprep.subr.bf16.mxu1 (!%p263_p2), %v1363_v3  ;;  %v1632_v49 = vld [vmem:[%s2026_s5] ss:$0 sm:$0xff] (!%p263_p2)  ;;  %s1264_s28 = sshll.u32 (!%p263_p2), %s1531_s27, 7  ;;  %s1480_s29 = smov (!%p263_p2), 0.0  }
   0xb   : > { %1368 = vmatprep.subr.bf16.mxu0 (!%p263_p2), %v1367_v5  ;;  %1366 = vmatpush3.bf16.msra.mxu1 (!%p263_p2), %v1363_v3  ;;  %p1265_p5 = scmp.ne.s32.totalorder (!%p263_p2), %s1531_s27, 1 }
   0xc   : > { %1370 = vmatpush3.bf16.msra.mxu0 (!%p263_p2), %v1367_v5 }
   0xf   : > { %s2034_s10 = smov (!%p307_p3, %s1225_s10), 24  ;;  %1398 = sst [smem:[#allocation2]] (%p1405_p4), %s1479_s24 }
  0x10   : > { %s1226_s13 = sshll.u32 %s2034_s10, 3  ;;  %1399 = sst [smem:[#allocation3]] (%p1405_p4), %s1480_s29 }
  0x11   : > { %s1551_s16 = scalar_lea.vmem %s2022_s1, %s1226_s13  ;;  %s1556_s19 = scalar_lea.vmem %s2021_s0, %s1226_s13 }
  0x12   : > { %v358_v6 = vld [vmem:[%s1551_s16] sm:$0xff]  ;;  %v359_v8 = vld [vmem:[%s1551_s16 + $0x8] sm:$0xff]  ;;  %v360_v10 = vld [vmem:[%s1551_s16 + $0x10] sm:$0xff]  ;;  %1400 = sst [smem:[#allocation4]] (%p1405_p4), %s1480_s29 }
  0x13   : > { %v340_v7 = vld [vmem:[%s1556_s19] sm:$0xff]  ;;  %1311 = vmatprep.mubr.msk.f32.mxu1 %vm376_vm0, %v358_v6  ;;  %v341_v9 = vld [vmem:[%s1556_s19 + $0x8] sm:$0xff]  ;;  %v342_v11 = vld [vmem:[%s1556_s19 + $0x10] sm:$0xff]  ;;  %s942_s6 = sld [smem:[#allocation2]] }
  0x14   : > { %1339 = vmatprep.mubr.msk.f32.mxu0 %vm376_vm0, %v340_v7  ;;  %1312 = vmatmul.mubr.msk.f32.vlgmr.msra.gmra.mrb[0].mxu1 %vm376_vm0, %v359_v8  ;;  %v361_v12 = vld [vmem:[%s1551_s16 + $0x18] sm:$0xff]  ;;  %v362_v14 = vld [vmem:[%s1551_s16 + $0x20] sm:$0xff]  ;;  %v363_v16 = vld [vmem:[%s1551_s16 + $0x28] sm:$0xff]  ;;  %s966_s10 = sld [smem:[#allocation3]] }
  0x15   : > { %1340 = vmatmul.mubr.msk.f32.vlgmr.msra.gmra.mrb[0].mxu0 %vm376_vm0, %v341_v9  ;;  %1314 = vmatprep.mubr.msk.f32.mxu1 %vm376_vm0, %v360_v10  ;;  %v343_v13 = vld [vmem:[%s1556_s19 + $0x18] sm:$0xff]  ;;  %v344_v15 = vld [vmem:[%s1556_s19 + $0x20] sm:$0xff]  ;;  %v345_v17 = vld [vmem:[%s1556_s19 + $0x28] sm:$0xff]  ;;  %s1082_s11 = sld [smem:[#allocation4]] }
  0x16   : > { %1342 = vmatprep.mubr.msk.f32.mxu0 %vm376_vm0, %v342_v11  ;;  %v364_v18 = vld [vmem:[%s1551_s16 + $0x30] sm:$0xff]  ;;  %v365_v20 = vld [vmem:[%s1551_s16 + $0x38] sm:$0xff]  ;;  %v366_v22 = vld [vmem:[%s1551_s16 + $0x40] sm:$0xff] }
  0x17   : > { %v346_v19 = vld [vmem:[%s1556_s19 + $0x30] sm:$0xff]  ;;  %v347_v21 = vld [vmem:[%s1556_s19 + $0x38] sm:$0xff]  ;;  %v348_v23 = vld [vmem:[%s1556_s19 + $0x40] sm:$0xff] }
  0x18   : > { %1315 = vmatmul.mubr.msk.f32.gmra.mrb[2].mxu1 %vm376_vm0, %v361_v12  ;;  %v367_v24 = vld [vmem:[%s1551_s16 + $0x48] sm:$0xff]  ;;  %v368_v26 = vld [vmem:[%s1551_s16 + $0x50] sm:$0xff]  ;;  %v369_v28 = vld [vmem:[%s1551_s16 + $0x58] sm:$0xff] }
  0x19   : > { %1343 = vmatmul.mubr.msk.f32.gmra.mrb[2].mxu0 %vm376_vm0, %v343_v13  ;;  %1317 = vmatprep.mubr.msk.f32.mxu1 %vm376_vm0, %v362_v14  ;;  %v349_v25 = vld [vmem:[%s1556_s19 + $0x48] sm:$0xff]  ;;  %v350_v27 = vld [vmem:[%s1556_s19 + $0x50] sm:$0xff]  ;;  %v351_v29 = vld [vmem:[%s1556_s19 + $0x58] sm:$0xff] }
  0x1a   : > { %1345 = vmatprep.mubr.msk.f32.mxu0 %vm376_vm0, %v344_v15  ;;  %v370_v30 = vld [vmem:[%s1551_s16 + $0x60] sm:$0xff]  ;;  %v371_v32 = vld [vmem:[%s1551_s16 + $0x68] sm:$0xff]  ;;  %v372_v34 = vld [vmem:[%s1551_s16 + $0x70] sm:$0xff] }
  0x1b   : > { %v352_v31 = vld [vmem:[%s1556_s19 + $0x60] sm:$0xff]  ;;  %v353_v33 = vld [vmem:[%s1556_s19 + $0x68] sm:$0xff]  ;;  %v354_v35 = vld [vmem:[%s1556_s19 + $0x70] sm:$0xff] }
  0x1c   : > { %1318 = vmatmul.mubr.msk.f32.gmra.mrb[4].mxu1 %vm376_vm0, %v363_v16  ;;  %v373_v36 = vld [vmem:[%s1551_s16 + $0x78] sm:$0xff] }
  0x1d   : > { %1346 = vmatmul.mubr.msk.f32.gmra.mrb[4].mxu0 %vm376_vm0, %v345_v17  ;;  %1320 = vmatprep.mubr.msk.f32.mxu1 %vm376_vm0, %v364_v18  ;;  %v355_v37 = vld [vmem:[%s1556_s19 + $0x78] sm:$0xff] }
  0x1e   : > { %1348 = vmatprep.mubr.msk.f32.mxu0 %vm376_vm0, %v346_v19 }
  0x20   : > { %1321 = vmatmul.mubr.msk.f32.gmra.mrb[6].mxu1 %vm376_vm0, %v365_v20 }
  0x21   : > { %1349 = vmatmul.mubr.msk.f32.gmra.mrb[6].mxu0 %vm376_vm0, %v347_v21  ;;  %1323 = vmatprep.mubr.msk.f32.mxu1 %vm376_vm0, %v366_v22 }
  0x22   : > { %1351 = vmatprep.mubr.msk.f32.mxu0 %vm376_vm0, %v348_v23 }
  0x24   : > { %1324 = vmatmul.mubr.msk.f32.gmra.mrb[8].mxu1 %vm376_vm0, %v367_v24 }
  0x25   : > { %1352 = vmatmul.mubr.msk.f32.gmra.mrb[8].mxu0 %vm376_vm0, %v349_v25  ;;  %1326 = vmatprep.mubr.msk.f32.mxu1 %vm376_vm0, %v368_v26 }
  0x26   : > { %1354 = vmatprep.mubr.msk.f32.mxu0 %vm376_vm0, %v350_v27 }
  0x28   : > { %1327 = vmatmul.mubr.msk.f32.gmra.mrb[10].mxu1 %vm376_vm0, %v369_v28 }
  0x29   : > { %1355 = vmatmul.mubr.msk.f32.gmra.mrb[10].mxu0 %vm376_vm0, %v351_v29  ;;  %1329 = vmatprep.mubr.msk.f32.mxu1 %vm376_vm0, %v370_v30 }
  0x2a   : > { %1357 = vmatprep.mubr.msk.f32.mxu0 %vm376_vm0, %v352_v31 }
  0x2c   : > { %1330 = vmatmul.mubr.msk.f32.gmra.mrb[12].mxu1 %vm376_vm0, %v371_v32 }
  0x2d   : > { %1358 = vmatmul.mubr.msk.f32.gmra.mrb[12].mxu0 %vm376_vm0, %v353_v33  ;;  %1332 = vmatprep.mubr.msk.f32.mxu1 %vm376_vm0, %v372_v34 }
  0x2e   : > { %1360 = vmatprep.mubr.msk.f32.mxu0 %vm376_vm0, %v354_v35 }
  0x30   : > { %1333 = vmatmul.mubr.msk.f32.gmra.mrb[14].mxu1 %vm376_vm0, %v373_v36 }
  0x31   : > { %1361 = vmatmul.mubr.msk.f32.gmra.mrb[14].mxu0 %vm376_vm0, %v355_v37 }
  0xe7   : > { %v1313_v38 = vpop.f32.mrb[0].mxu1 }
  0xe8   : > { %v1341_v39 = vpop.f32.mrb[0].mxu0  ;;  %v491_v42 = vpop.f32.mrb[1].mxu1 }
  0xe9   : > { %v690_v41 = vadd.f32 %v1341_v39, %v1313_v38  ;;  %v684_v43 = vpop.f32.mrb[1].mxu0 }
  0xea   : > { %v685_v44 = vadd.f32 %v684_v43, %v491_v42 }
  0xeb   : > { %v771_v45 = vadd.f32 %v1625_v40, %v690_v41  ;;  %v1316_v47 = vpop.f32.mrb[2].mxu1 }
  0xec   : > { %v770_v46 = vadd.f32 %v1625_v40, %v685_v44  ;;  %v1344_v48 = vpop.f32.mrb[2].mxu0  ;;  %v501_v51 = vpop.f32.mrb[3].mxu1 }
  0xed   : > { %v700_v50 = vadd.f32 %v1344_v48, %v1316_v47  ;;  %v694_v52 = vpop.f32.mrb[3].mxu0  ;;  %v787_v53 = vmax.f32 %v771_v45, 0.0 }
  0xee   : > { %v695_v54 = vadd.f32 %v694_v52, %v501_v51  ;;  %v786_v55 = vmax.f32 %v770_v46, 0.0 }
  0xef   : > { %v810_v56 = vmul.f32 %v1632_v49, %v787_v53  ;;  %v773_v57 = vadd.f32 %v1625_v40, %v700_v50  ;;  %v1319_v59 = vpop.f32.mrb[4].mxu1 }
  0xf0   : > { %v772_v58 = vadd.f32 %v1625_v40, %v695_v54  ;;  %v1347_v60 = vpop.f32.mrb[4].mxu0  ;;  %v511_v62 = vpop.f32.mrb[5].mxu1  ;;  %v809_v5 = vmul.f32 %v1632_v49, %v786_v55 }
  0xf1   : > { %v710_v61 = vadd.f32 %v1347_v60, %v1319_v59  ;;  %827 = vadd.xlane.f32.xlu0 %v810_v56  ;;  %v704_v63 = vpop.f32.mrb[5].mxu0  ;;  %v789_v0 = vmax.f32 %v773_v57, 0.0 }
  0xf2   : > { %v705_v1 = vadd.f32 %v704_v63, %v511_v62  ;;  %v788_v2 = vmax.f32 %v772_v58, 0.0 }
  0xf3   : > { %v775_v3 = vadd.f32 %v1625_v40, %v710_v61  ;;  %v812_v4 = vmul.f32 %v1632_v49, %v789_v0  ;;  %v1322_v7 = vpop.f32.mrb[6].mxu1 }
  0xf4   : > { %v774_v6 = vadd.f32 %v1625_v40, %v705_v1  ;;  %v1350_v8 = vpop.f32.mrb[6].mxu0  ;;  %v521_v11 = vpop.f32.mrb[7].mxu1  ;;  %v811_v16 = vmul.f32 %v1632_v49, %v788_v2 }
  0xf5   : > { %v791_v9 = vmax.f32 %v775_v3, 0.0  ;;  %v720_v10 = vadd.f32 %v1350_v8, %v1322_v7  ;;  %831 = vadd.xlane.f32.xlu1 %v812_v4  ;;  %v714_v12 = vpop.f32.mrb[7].mxu0  ;;  %825 = vadd.xlane.f32.xlu0 %v809_v5 }
  0xf6   : > { %v790_v13 = vmax.f32 %v774_v6, 0.0  ;;  %v715_v14 = vadd.f32 %v714_v12, %v521_v11  ;;  %v1671_v12 = vstv %s1264_s28 }
  0xf7   : > { %v777_v15 = vadd.f32 %v1625_v40, %v720_v10  ;;  %v1325_v18 = vpop.f32.mrb[8].mxu1  ;;  %v814_v25 = vmul.f32 %v1632_v49, %v791_v9 }
  0xf8   : > { %v776_v17 = vadd.f32 %v1625_v40, %v715_v14  ;;  %v1353_v19 = vpop.f32.mrb[8].mxu0  ;;  %v813_v20 = vmul.f32 %v1632_v49, %v790_v13  ;;  %v531_v23 = vpop.f32.mrb[9].mxu1  ;;  %v1673_v13 = vstv %s857_s25 }
  0xf9   : > { %v793_v21 = vmax.f32 %v777_v15, 0.0  ;;  %v730_v22 = vadd.f32 %v1353_v19, %v1325_v18  ;;  %v724_v24 = vpop.f32.mrb[9].mxu0  ;;  %829 = vadd.xlane.f32.xlu1 %v811_v16 }
  0xfa   : > { %v792_v26 = vmax.f32 %v776_v17, 0.0  ;;  %v725_v27 = vadd.f32 %v724_v24, %v531_v23  ;;  %833 = vadd.xlane.f32.xlu0 %v813_v20 }
  0xfb   : > { %v779_v28 = vadd.f32 %v1625_v40, %v730_v22  ;;  %v1328_v30 = vpop.f32.mrb[10].mxu1  ;;  %v816_v37 = vmul.f32 %v1632_v49, %v793_v21 }
  0xfc   : > { %v778_v29 = vadd.f32 %v1625_v40, %v725_v27  ;;  %v1356_v31 = vpop.f32.mrb[10].mxu0  ;;  %v815_v32 = vmul.f32 %v1632_v49, %v792_v26  ;;  %v541_v35 = vpop.f32.mrb[11].mxu1 }
  0xfd   : > { %v795_v33 = vmax.f32 %v779_v28, 0.0  ;;  %v740_v34 = vadd.f32 %v1356_v31, %v1328_v30  ;;  %v734_v36 = vpop.f32.mrb[11].mxu0  ;;  %835 = vadd.xlane.f32.xlu1 %v814_v25 }
  0xfe   : > { %v794_v38 = vmax.f32 %v778_v29, 0.0  ;;  %v735_v39 = vadd.f32 %v734_v36, %v541_v35  ;;  %837 = vadd.xlane.f32.xlu0 %v815_v32 }
  0xff   : > { %v781_v41 = vadd.f32 %v1625_v40, %v740_v34  ;;  %v1331_v43 = vpop.f32.mrb[12].mxu1  ;;  %v818_v51 = vmul.f32 %v1632_v49, %v795_v33 }
 0x100   : > { %v780_v42 = vadd.f32 %v1625_v40, %v735_v39  ;;  %v1359_v44 = vpop.f32.mrb[12].mxu0  ;;  %v817_v45 = vmul.f32 %v1632_v49, %v794_v38  ;;  %v551_v48 = vpop.f32.mrb[13].mxu1 }
 0x101   : > { %v797_v46 = vmax.f32 %v781_v41, 0.0  ;;  %v750_v47 = vadd.f32 %v1359_v44, %v1331_v43  ;;  %v744_v50 = vpop.f32.mrb[13].mxu0  ;;  %839 = vadd.xlane.f32.xlu1 %v816_v37 }
 0x102   : > { %v796_v52 = vmax.f32 %v780_v42, 0.0  ;;  %v745_v53 = vadd.f32 %v744_v50, %v551_v48  ;;  %841 = vadd.xlane.f32.xlu0 %v817_v45 }
 0x103   : > { %v783_v54 = vadd.f32 %v1625_v40, %v750_v47  ;;  %v1334_v56 = vpop.f32.mrb[14].mxu1  ;;  %v820_v63 = vmul.f32 %v1632_v49, %v797_v46 }
 0x104   : > { %v782_v55 = vadd.f32 %v1625_v40, %v745_v53  ;;  %v1362_v57 = vpop.f32.mrb[14].mxu0  ;;  %v819_v58 = vmul.f32 %v1632_v49, %v796_v52  ;;  %v561_v61 = vpop.f32.mrb[15].mxu1 }
 0x105   : > { %v799_v59 = vmax.f32 %v783_v54, 0.0  ;;  %v760_v60 = vadd.f32 %v1362_v57, %v1334_v56  ;;  %v754_v62 = vpop.f32.mrb[15].mxu0  ;;  %843 = vadd.xlane.f32.xlu1 %v818_v51 }
 0x106   : > { %v798_v0 = vmax.f32 %v782_v55, 0.0  ;;  %v755_v1 = vadd.f32 %v754_v62, %v561_v61  ;;  %845 = vadd.xlane.f32.xlu0 %v819_v58 }
 0x107   : > { %v785_v2 = vadd.f32 %v1625_v40, %v760_v60  ;;  %v822_v6 = vmul.f32 %v1632_v49, %v799_v59 }
 0x108   : > { %v784_v3 = vadd.f32 %v1625_v40, %v755_v1  ;;  %v821_v4 = vmul.f32 %v1632_v49, %v798_v0  ;;  %v875_v40 = vlaneseq }
 0x109   : > { %v801_v5 = vmax.f32 %v785_v2, 0.0  ;;  %847 = vadd.xlane.f32.xlu1 %v820_v63 }
 0x10a   : > { %v800_v7 = vmax.f32 %v784_v3, 0.0  ;;  %849 = vadd.xlane.f32.xlu0 %v821_v4  ;;  %v1667_v10 = vshrl.u32 %v875_v40, 7 }
 0x10b   : > { %v824_v9 = vmul.f32 %v1632_v49, %v801_v5 }
 0x10c   : > { %v823_v8 = vmul.f32 %v1632_v49, %v800_v7  ;;  %v877_v11 = vadd.s32 8, %v1667_v10  ;;  %v879_v15 = vadd.s32 24, %v1667_v10  ;;  %v1681_v16 = vadd.s32 %v1671_v12, %v1667_v10 }
 0x10d   : > { %851 = vadd.xlane.f32.xlu1 %v822_v6  ;;  %v878_v17 = vadd.s32 16, %v1667_v10  ;;  %v880_v18 = vadd.s32 32, %v1667_v10  ;;  %v881_v19 = vadd.s32 40, %v1667_v10  ;;  %v882_v20 = vadd.s32 48, %v1667_v10 }
 0x10e   : > { %853 = vadd.xlane.f32.xlu0 %v823_v8  ;;  %v1676_v14 = vadd.s32 %v1671_v12, %v877_v11  ;;  %v1692_v22 = vadd.s32 %v1671_v12, %v879_v15  ;;  %vm910_vm2 = vcmp.lt.s32.totalorder %v1681_v16, 200  ;;  %v883_v30 = vadd.s32 56, %v1667_v10 }
 0x10f   : > { %v1696_v25 = vadd.s32 %v1671_v12, %v878_v17  ;;  %v1702_v27 = vadd.s32 %v1671_v12, %v880_v18  ;;  %v1705_v28 = vadd.s32 %v1671_v12, %v881_v19  ;;  %v1708_v29 = vadd.s32 %v1671_v12, %v882_v20 }
 0x110   : > { %vm2029_vm1 = vcmp.lt.s32.totalorder %v1676_v14, 200  ;;  %v884_v34 = vadd.s32 64, %v1667_v10  ;;  %vm913_vm4 = vcmp.lt.s32.totalorder %v1692_v22, 200  ;;  %v1735_v42 = vadd.s32 %v1671_v12, %v883_v30 }
 0x111   : > { %855 = vadd.xlane.f32.xlu1 %v824_v9  ;;  %vm912_vm5 = vcmp.lt.s32.totalorder %v1696_v25, 200  ;;  %vm914_vm6 = vcmp.lt.s32.totalorder %v1702_v27, 200  ;;  %vm915_vm7 = vcmp.lt.s32.totalorder %v1705_v28, 200  ;;  %vm916_vm8 = vcmp.lt.s32.totalorder %v1708_v29, 200 }
 0x112   : > { %v1744_v46 = vadd.s32 %v1671_v12, %v884_v34  ;;  %v885_v51 = vadd.s32 72, %v1667_v10  ;;  %v886_v52 = vadd.s32 80, %v1667_v10  ;;  %v887_v56 = vadd.s32 88, %v1667_v10 }
 0x113   : > { %v888_v57 = vadd.s32 96, %v1667_v10  ;;  %v889_v61 = vadd.s32 104, %v1667_v10  ;;  %vm917_vm9 = vcmp.lt.s32.totalorder %v1735_v42, 200  ;;  %v890_v0 = vadd.s32 112, %v1667_v10 }
 0x114   : > { %v1766_v3 = vadd.s32 %v1671_v12, %v885_v51  ;;  %v1769_v4 = vadd.s32 %v1671_v12, %v886_v52  ;;  %v891_v5 = vadd.s32 120, %v1667_v10  ;;  %v1774_v9 = vadd.s32 %v1671_v12, %v887_v56 }
 0x115   : > { %v1777_v40 = vadd.s32 %v1671_v12, %v888_v57  ;;  %v1783_v17 = vadd.s32 %v1671_v12, %v889_v61  ;;  %vm918_vm10 = vcmp.lt.s32.totalorder %v1744_v46, 200  ;;  %v1789_v19 = vadd.s32 %v1671_v12, %v890_v0 }
 0x116   : > { %vm919_vm11 = vcmp.lt.s32.totalorder %v1766_v3, 200  ;;  %vm920_vm12 = vcmp.lt.s32.totalorder %v1769_v4, 200  ;;  %vm921_vm13 = vcmp.lt.s32.totalorder %v1774_v9, 200 }
 0x117   : > { %vm922_vm14 = vcmp.lt.s32.totalorder %v1777_v40, 200  ;;  %vm923_vm15 = vcmp.lt.s32.totalorder %v1783_v17, 200  ;;  %vm924_vm0 = vcmp.lt.s32.totalorder %v1789_v19, 200 }
 0x17e   : > { %v828_v49 = vpop.xlane.xlu0 %827 }
 0x17f   : > { %v1688_v21 = vadd.f32 %v1673_v13, %v828_v49 }
 0x181   : > { %v1084_v31 = vsel %vm2029_vm1, %v1688_v21, 0.0 }
 0x182   : > { %v832_v23 = vpop.xlane.xlu1 %831  ;;  %v826_v24 = vpop.xlane.xlu0 %825  ;;  %v1100_v39 = vsel %vm1038_vm3, %v1084_v31, 0.0 }
 0x183   : > { %v1699_v26 = vadd.f32 %v1673_v13, %v826_v24  ;;  %v1715_v32 = vadd.f32 %v1673_v13, %v832_v23  ;;  %v1796_v24 = vadd.s32 %v1671_v12, %v891_v5  ;;  %v1808_v12 = vsel %vm2029_vm1, %v1688_v21, -inf }
 0x185   : > { %v1083_v33 = vsel %vm910_vm2, %v1699_v26, 0.0  ;;  %v1086_v43 = vsel %vm913_vm4, %v1715_v32, 0.0  ;;  %vm2030_vm1 = vcmp.lt.s32.totalorder %v1796_v24, 200 }
 0x186   : > { %v1099_v35 = vsel %vm1038_vm3, %v1083_v33, 0.0  ;;  %v830_v36 = vpop.xlane.xlu1 %829  ;;  %v1104_v58 = vsel %vm1038_vm3, %v1086_v43, 0.0  ;;  %v1816_v43 = vsel %vm913_vm4, %v1715_v32, -inf }
 0x187   : > { %v1725_v37 = vadd.f32 %v1673_v13, %v830_v36  ;;  %v834_v38 = vpop.xlane.xlu0 %833  ;;  %v1101_v44 = vadd.f32 %v1100_v39, %v1099_v35 }
 0x188   : > { %v1731_v41 = vadd.f32 %v1673_v13, %v834_v38 }
 0x189   : > { %v1085_v45 = vsel %vm912_vm5, %v1725_v37, 0.0 }
 0x18a   : > { %v1102_v47 = vsel %vm1038_vm3, %v1085_v45, 0.0  ;;  %v1087_v48 = vsel %vm914_vm6, %v1731_v41, 0.0  ;;  %v836_v50 = vpop.xlane.xlu1 %835  ;;  %v1826_v21 = vsel %vm914_vm6, %v1731_v41, -inf  ;;  %v1843_v41 = vsel %vm912_vm5, %v1725_v37, -inf }
 0x18b   : > { %v1103_v53 = vadd.f32 %v1102_v47, %v1101_v44  ;;  %v864_v54 = vadd.f32 %v1673_v13, %v836_v50  ;;  %v838_v55 = vpop.xlane.xlu0 %837  ;;  %v1106_v59 = vsel %vm1038_vm3, %v1087_v48, 0.0  ;;  %v1821_v44 = vsel %vm910_vm2, %v1699_v26, -inf }
 0x18c   : > { %v865_v60 = vadd.f32 %v1673_v13, %v838_v55  ;;  %v943_v55 = vmax.f32 %v1821_v44, %v1826_v21 }
 0x18d   : > { %v1105_v62 = vadd.f32 %v1104_v58, %v1103_v53  ;;  %v1088_v63 = vsel %vm915_vm7, %v864_v54, 0.0  ;;  %v1833_v32 = vsel %vm915_vm7, %v864_v54, -inf }
 0x18e   : > { %v1089_v1 = vsel %vm916_vm8, %v865_v60, 0.0  ;;  %v840_v2 = vpop.xlane.xlu1 %839  ;;  %v1108_v11 = vsel %vm1038_vm3, %v1088_v63, 0.0  ;;  %v1837_v48 = vsel %vm916_vm8, %v865_v60, -inf  ;;  %v944_v37 = vmax.f32 %v1808_v12, %v1833_v32 }
 0x18f   : > { %v1107_v6 = vadd.f32 %v1106_v59, %v1105_v62  ;;  %v866_v7 = vadd.f32 %v1673_v13, %v840_v2  ;;  %v842_v8 = vpop.xlane.xlu0 %841  ;;  %v1110_v49 = vsel %vm1038_vm3, %v1089_v1, 0.0  ;;  %v945_v59 = vmax.f32 %v1843_v41, %v1837_v48 }
 0x190   : > { %v867_v15 = vadd.f32 %v1673_v13, %v842_v8 }
 0x191   : > { %v1109_v10 = vadd.f32 %v1108_v11, %v1107_v6  ;;  %v1090_v18 = vsel %vm917_vm9, %v866_v7, 0.0  ;;  %v1852_v56 = vsel %vm917_vm9, %v866_v7, -inf }
 0x192   : > { %v1091_v20 = vsel %vm918_vm10, %v867_v15, 0.0  ;;  %v844_v23 = vpop.xlane.xlu1 %843  ;;  %v1112_v34 = vsel %vm1038_vm3, %v1090_v18, 0.0  ;;  %v1862_v60 = vsel %vm918_vm10, %v867_v15, -inf  ;;  %v946_v6 = vmax.f32 %v1816_v43, %v1852_v56 }
 0x193   : > { %v1111_v30 = vadd.f32 %v1110_v49, %v1109_v10  ;;  %v868_v31 = vadd.f32 %v1673_v13, %v844_v23  ;;  %v846_v33 = vpop.xlane.xlu0 %845  ;;  %v1114_v35 = vsel %vm1038_vm3, %v1091_v20, 0.0  ;;  %v947_v20 = vmax.f32 %v943_v55, %v1862_v60 }
 0x194   : > { %v869_v36 = vadd.f32 %v1673_v13, %v846_v33 }
 0x195   : > { %v1113_v38 = vadd.f32 %v1112_v34, %v1111_v30  ;;  %v1092_v39 = vsel %vm919_vm11, %v868_v31, 0.0  ;;  %v1868_v63 = vsel %vm919_vm11, %v868_v31, -inf }
 0x196   : > { %v1093_v45 = vsel %vm920_vm12, %v869_v36, 0.0  ;;  %v848_v47 = vpop.xlane.xlu1 %847  ;;  %v1116_v52 = vsel %vm1038_vm3, %v1092_v39, 0.0  ;;  %v1872_v0 = vsel %vm920_vm12, %v869_v36, -inf  ;;  %v948_v23 = vmax.f32 %v944_v37, %v1868_v63 }
 0x197   : > { %v1115_v26 = vadd.f32 %v1114_v35, %v1113_v38  ;;  %v870_v50 = vadd.f32 %v1673_v13, %v848_v47  ;;  %v850_v51 = vpop.xlane.xlu0 %849  ;;  %v1118_v53 = vsel %vm1038_vm3, %v1093_v45, 0.0  ;;  %v949_v30 = vmax.f32 %v945_v59, %v1872_v0 }
 0x198   : > { %v871_v54 = vadd.f32 %v1673_v13, %v850_v51 }
 0x199   : > { %v1117_v57 = vadd.f32 %v1116_v52, %v1115_v26  ;;  %v1094_v58 = vsel %vm921_vm13, %v870_v50, 0.0  ;;  %v1886_v49 = vsel %vm921_vm13, %v870_v50, -inf }
 0x19a   : > { %v1095_v61 = vsel %vm922_vm14, %v871_v54, 0.0  ;;  %v852_v62 = vpop.xlane.xlu1 %851  ;;  %v1120_v7 = vsel %vm1038_vm3, %v1094_v58, 0.0  ;;  %v1901_v34 = vsel %vm922_vm14, %v871_v54, -inf  ;;  %v950_v39 = vmax.f32 %v946_v6, %v1886_v49 }
 0x19b   : > { %v1119_v1 = vadd.f32 %v1118_v53, %v1117_v57  ;;  %v872_v2 = vadd.f32 %v1673_v13, %v852_v62  ;;  %v854_v5 = vpop.xlane.xlu0 %853  ;;  %v1122_v8 = vsel %vm1038_vm3, %v1095_v61, 0.0  ;;  %v951_v53 = vmax.f32 %v947_v20, %v1901_v34 }
 0x19c   : > { %v873_v11 = vadd.f32 %v1673_v13, %v854_v5 }
 0x19d   : > { %v1121_v15 = vadd.f32 %v1120_v7, %v1119_v1  ;;  %v1890_v10 = vsel %vm923_vm15, %v872_v2, -inf  ;;  %v1096_v18 = vsel %vm923_vm15, %v872_v2, 0.0 }
 0x19e   : > { %v1097_v31 = vsel %vm924_vm0, %v873_v11, 0.0  ;;  %v856_v33 = vpop.xlane.xlu1 %855  ;;  %v1905_v36 = vsel %vm924_vm0, %v873_v11, -inf  ;;  %v952_v45 = vmax.f32 %v948_v23, %v1890_v10  ;;  %v1124_v47 = vsel %vm1038_vm3, %v1096_v18, 0.0 }
 0x19f   : > { %v1123_v35 = vadd.f32 %v1122_v8, %v1121_v15  ;;  %v874_v38 = vadd.f32 %v1673_v13, %v856_v33  ;;  %v1126_v26 = vsel %vm1038_vm3, %v1097_v31, 0.0  ;;  %v953_v13 = vmax.f32 %v949_v30, %v1905_v36 }
 0x1a0   : > { %v955_v57 = vmax.f32 %v951_v53, %v952_v45 }
 0x1a1   : > { %v1125_v50 = vadd.f32 %v1124_v47, %v1123_v35  ;;  %v1914_v51 = vsel %vm2030_vm1, %v874_v38, -inf  ;;  %v1098_v52 = vsel %vm2030_vm1, %v874_v38, 0.0  ;;  %vm2031_vm1 = vcmp.lt.s32.totalorder %v1676_v14, 200 }
 0x1a2   : > { %v954_v54 = vmax.f32 %v950_v39, %v1914_v51  ;;  %v1128_v37 = vsel %vm1038_vm3, %v1098_v52, 0.0 }
 0x1a3   : > { %v1127_v55 = vadd.f32 %v1126_v26, %v1125_v50 }
 0x1a4   : > { %v956_v58 = vmax.f32 %v953_v13, %v954_v54 }
 0x1a5   : > { %v1129_v59 = vadd.f32 %v1128_v37, %v1127_v55 }
 0x1a6   : > { %v957_v61 = vmax.f32 %v955_v57, %v956_v58 }
 0x1a7   : > { %1130 = vadd.xlane.f32.xlu1 %v1129_v59 }
 0x1a8   : > { %v958_v62 = vrot.slane %v957_v61, 4 }
 0x1aa   : > { %v959_v1 = vmax.f32 %v957_v61, %v958_v62 }
 0x1ac   : > { %v960_v2 = vrot.slane %v959_v1, 2 }
 0x1ae   : > { %v961_v5 = vmax.f32 %v959_v1, %v960_v2 }
 0x1b0   : > { %v962_v6 = vrot.slane %v961_v5, 1 }
 0x1b2   : > { %v963_v7 = vmax.f32 %v961_v5, %v962_v6 }
 0x1b4   : > { %1387 = vpush %v963_v7 }
 0x1e5   : > { %s1388_s30 = spop %1387 }
 0x1e6   : > { %s965_s8 = smax.f32 %s1388_s30, %s942_s6 }
 0x1e7   : > { %s967_s9 = ssub.f32 %s942_s6, %s965_s8  ;;  %v1922_v8 = vstv %s965_s8 }
 0x1e8   : > { %1143 = sst [smem:[#allocation2]] %s965_s8  ;;  %v974_v11 = vsub.f32 %v1821_v44, %v1922_v8  ;;  %v975_v18 = vsub.f32 %v1808_v12, %v1922_v8  ;;  %v976_v20 = vsub.f32 %v1843_v41, %v1922_v8  ;;  %v977_v23 = vsub.f32 %v1816_v43, %v1922_v8 }
 0x1e9   : > { %v968_v15 = vstv %s967_s9  ;;  %v978_v31 = vsub.f32 %v1826_v21, %v1922_v8  ;;  %v979_v33 = vsub.f32 %v1833_v32, %v1922_v8  ;;  %v980_v44 = vsub.f32 %v1837_v48, %v1922_v8  ;;  %s1152_s20 = sld [smem:[#allocation2]] (!%p1265_p5) }
 0x1ea   : > { %v969_v30 = vmul.f32 1.442695, %v968_v15  ;;  %v990_v35 = vmul.f32 1.442695, %v974_v11  ;;  %v992_v38 = vmul.f32 1.442695, %v975_v18  ;;  %v981_v43 = vsub.f32 %v1852_v56, %v1922_v8 }
 0x1eb   : > { %v994_v12 = vmul.f32 1.442695, %v976_v20  ;;  %v996_v39 = vmul.f32 1.442695, %v977_v23  ;;  %v998_v41 = vmul.f32 1.442695, %v978_v31  ;;  %v982_v21 = vsub.f32 %v1862_v60, %v1922_v8 }
 0x1ec   : > { %1419 = vpow2.f32 %v969_v30  ;;  %v1000_v45 = vmul.f32 1.442695, %v979_v33  ;;  %v1002_v32 = vmul.f32 1.442695, %v980_v44  ;;  %v983_v48 = vsub.f32 %v1868_v63, %v1922_v8 }
 0x1ed   : > { %1421 = vpow2.f32 %v990_v35  ;;  %v1004_v47 = vmul.f32 1.442695, %v981_v43  ;;  %v984_v26 = vsub.f32 %v1872_v0, %v1922_v8  ;;  %v1006_v50 = vmul.f32 1.442695, %v982_v21 }
 0x1ee   : > { %1423 = vpow2.f32 %v992_v38  ;;  %v985_v52 = vsub.f32 %v1886_v49, %v1922_v8  ;;  %v1008_v60 = vmul.f32 1.442695, %v983_v48  ;;  %v986_v54 = vsub.f32 %v1901_v34, %v1922_v8 }
 0x1ef   : > { %1425 = vpow2.f32 %v994_v12  ;;  %v1010_v63 = vmul.f32 1.442695, %v984_v26  ;;  %v987_v57 = vsub.f32 %v1890_v10, %v1922_v8  ;;  %v988_v14 = vsub.f32 %v1905_v36, %v1922_v8 }
 0x1f0   : > { %1427 = vpow2.f32 %v996_v39  ;;  %v1012_v59 = vmul.f32 1.442695, %v985_v52  ;;  %v1014_v10 = vmul.f32 1.442695, %v986_v54  ;;  %v989_v11 = vsub.f32 %v1914_v51, %v1922_v8 }
 0x1f1   : > { %1429 = vpow2.f32 %v998_v41  ;;  %v1016_v22 = vmul.f32 1.442695, %v987_v57  ;;  %v1018_v23 = vmul.f32 1.442695, %v988_v14 }
 0x1f2   : > { %1431 = vpow2.f32 %v1000_v45  ;;  %v1020_v51 = vmul.f32 1.442695, %v989_v11 }
 0x1f3   : > { %1433 = vpow2.f32 %v1002_v32 }
 0x1f4   : > { %1435 = vpow2.f32 %v1004_v47 }
 0x1f5   : > { %1437 = vpow2.f32 %v1006_v50 }
 0x1f6   : > { %v1420_v56 = vpop.eup %1419  ;;  %1439 = vpow2.f32 %v1008_v60 }
 0x1f7   : > { %1389 = vpush %v1420_v56  ;;  %v1422_v53 = vpop.eup %1421  ;;  %1441 = vpow2.f32 %v1010_v63 }
 0x1f8   : > { %v1424_v13 = vpop.eup %1423  ;;  %v1022_v55 = vsel %vm910_vm2, %v1422_v53, 0.0  ;;  %1443 = vpow2.f32 %v1012_v59 }
 0x1f9   : > { %v1426_v0 = vpop.eup %1425  ;;  %v1023_v58 = vsel %vm2031_vm1, %v1424_v13, 0.0  ;;  %v1039_v49 = vsel %vm1038_vm3, %v1022_v55, 0.0  ;;  %1445 = vpow2.f32 %v1014_v10  ;;  %vm2032_vm1 = vcmp.lt.s32.totalorder %v1796_v24, 200 }
 0x1fa   : > { %v1428_v37 = vpop.eup %1427  ;;  %v1024_v34 = vsel %vm912_vm5, %v1426_v0, 0.0  ;;  %v1040_v61 = vsel %vm1038_vm3, %v1023_v58, 0.0  ;;  %1447 = vpow2.f32 %v1016_v22 }
 0x1fb   : > { %v1430_v62 = vpop.eup %1429  ;;  %v1025_v16 = vsel %vm913_vm4, %v1428_v37, 0.0  ;;  %v1041_v1 = vadd.f32 %v1040_v61, %v1039_v49  ;;  %v1042_v5 = vsel %vm1038_vm3, %v1024_v34, 0.0  ;;  %1449 = vpow2.f32 %v1018_v23 }
 0x1fc   : > { %v1432_v2 = vpop.eup %1431  ;;  %v1026_v6 = vsel %vm914_vm6, %v1430_v62, 0.0  ;;  %v1044_v15 = vsel %vm1038_vm3, %v1025_v16, 0.0  ;;  %1451 = vpow2.f32 %v1020_v51 }
 0x1fd   : > { %v1043_v25 = vadd.f32 %v1042_v5, %v1041_v1  ;;  %v1434_v7 = vpop.eup %1433  ;;  %v1027_v18 = vsel %vm915_vm7, %v1432_v2, 0.0  ;;  %v1046_v30 = vsel %vm1038_vm3, %v1026_v6, 0.0 }
 0x1fe   : > { %v1436_v20 = vpop.eup %1435  ;;  %v1028_v27 = vsel %vm916_vm8, %v1434_v7, 0.0  ;;  %v1048_v8 = vsel %vm1038_vm3, %v1027_v18, 0.0 }
 0x1ff   : > { %v1045_v36 = vadd.f32 %v1044_v15, %v1043_v25  ;;  %v1438_v33 = vpop.eup %1437  ;;  %v1029_v35 = vsel %vm917_vm9, %v1436_v20, 0.0  ;;  %v1050_v38 = vsel %vm1038_vm3, %v1028_v27, 0.0 }
 0x200   : > { %v1440_v44 = vpop.eup %1439  ;;  %v1030_v12 = vsel %vm918_vm10, %v1438_v33, 0.0  ;;  %v1052_v41 = vsel %vm1038_vm3, %v1029_v35, 0.0 }
 0x201   : > { %v1047_v31 = vadd.f32 %v1046_v30, %v1045_v36  ;;  %v1442_v29 = vpop.eup %1441  ;;  %v1031_v43 = vsel %vm919_vm11, %v1440_v44, 0.0  ;;  %v1054_v42 = vsel %vm1038_vm3, %v1030_v12, 0.0 }
 0x202   : > { %v1444_v21 = vpop.eup %1443  ;;  %v1032_v32 = vsel %vm920_vm12, %v1442_v29, 0.0  ;;  %v1056_v46 = vsel %vm1038_vm3, %v1031_v43, 0.0 }
 0x203   : > { %v1049_v28 = vadd.f32 %v1048_v8, %v1047_v31  ;;  %v1446_v47 = vpop.eup %1445  ;;  %v1033_v26 = vsel %vm921_vm13, %v1444_v21, 0.0  ;;  %v1058_v52 = vsel %vm1038_vm3, %v1032_v32, 0.0 }
 0x204   : > { %v1448_v56 = vpop.eup %1447  ;;  %v1034_v3 = vsel %vm922_vm14, %v1446_v47, 0.0  ;;  %v1060_v13 = vsel %vm1038_vm3, %v1033_v26, 0.0 }
 0x205   : > { %v1051_v39 = vadd.f32 %v1050_v38, %v1049_v28  ;;  %v1450_v53 = vpop.eup %1449  ;;  %v1035_v4 = vsel %vm923_vm15, %v1448_v56, 0.0  ;;  %v1062_v55 = vsel %vm1038_vm3, %v1034_v3, 0.0 }
 0x206   : > { %v1452_v63 = vpop.eup %1451  ;;  %v1036_v9 = vsel %vm924_vm0, %v1450_v53, 0.0  ;;  %v1064_v57 = vsel %vm1038_vm3, %v1035_v4, 0.0 }
 0x207   : > { %v1053_v45 = vadd.f32 %v1052_v41, %v1051_v39  ;;  %v1037_v40 = vsel %vm2032_vm1, %v1452_v63, 0.0  ;;  %v1066_v49 = vsel %vm1038_vm3, %v1036_v9, 0.0 }
 0x208   : > { %v1068_v17 = vsel %vm1038_vm3, %v1037_v40, 0.0 }
 0x209   : > { %v1055_v48 = vadd.f32 %v1054_v42, %v1053_v45 }
 0x20b   : > { %v1057_v50 = vadd.f32 %v1056_v46, %v1055_v48 }
 0x20d   : > { %v1059_v60 = vadd.f32 %v1058_v52, %v1057_v50 }
 0x20f   : > { %v1061_v54 = vadd.f32 %v1060_v13, %v1059_v60 }
 0x211   : > { %v1063_v0 = vadd.f32 %v1062_v55, %v1061_v54 }
 0x213   : > { %v1065_v58 = vadd.f32 %v1064_v57, %v1063_v0 }
 0x215   : > { %v1067_v37 = vadd.f32 %v1066_v49, %v1065_v58 }
 0x217   : > { %v1069_v59 = vadd.f32 %v1068_v17, %v1067_v37 }
 0x219   : > { %1070 = vadd.xlane.f32.xlu0 %v1069_v59 }
 0x228   : > { %s1390_s12 = spop %1389 }
 0x229   : > { %s972_s13 = smul.f32 %s1390_s12, %s966_s10 }
 0x234   : > { %v1131_v34 = vpop.xlane.xlu1 %1130 }
 0x235   : > { %v1132_v61 = vrot.slane %v1131_v34, 4 }
 0x237   : > { %v1133_v62 = vadd.f32 %v1132_v61, %v1131_v34 }
 0x239   : > { %v1134_v16 = vrot.slane %v1133_v62, 2 }
 0x23b   : > { %v1135_v14 = vadd.f32 %v1134_v16, %v1133_v62 }
 0x23d   : > { %v1136_v24 = vrot.slane %v1135_v14, 1 }
 0x23f   : > { %v1137_v7 = vadd.f32 %v1136_v24, %v1135_v14 }
 0x2a6   : > { %v1071_v19 = vpop.xlane.xlu0 %1070 }
 0x2a7   : > { %v1072_v1 = vrot.slane %v1071_v19, 4 }
 0x2a9   : > { %v1073_v2 = vadd.f32 %v1072_v1, %v1071_v19 }
 0x2ab   : > { %v1074_v10 = vrot.slane %v1073_v2, 2 }
 0x2ad   : > { %v1075_v5 = vadd.f32 %v1074_v10, %v1073_v2 }
 0x2af   : > { %v1076_v6 = vrot.slane %v1075_v5, 1 }
 0x2b1   : > { %v1077_v25 = vadd.f32 %v1076_v6, %v1075_v5 }
 0x2b3   : > { %1391 = vpush %v1077_v25 }
 0x2b4   : > { %1393 = vpush %v1137_v7 }
 0x2e2   : > { %1147 = sbr.rel (%p1265_p5) target bundleno = 824 (0x338), region = 56 }
 0x2e4   : > { %s1392_s14 = spop %1391 }
 0x2e5   : > { %s1079_s15 = sadd.f32 %s1392_s14, %s972_s13  ;;  %s1394_s16 = spop %1393 }
 0x2e6   : > { %s1139_s17 = sadd.f32 %s1394_s16, %s1082_s11 }
 0x2e7   : > { %1081 = sst [smem:[#allocation3]] %s1079_s15 }
 0x2e8   : > { %1141 = sst [smem:[#allocation4]] %s1139_s17 }
 0x2e9   : > { %s1153_s18 = sld [smem:[#allocation3]] }
 0x2ea   : > { %s1148_s19 = sld [smem:[#allocation4]] }
 0x2ef   : > { %v1154_v11 = vstv %s1153_s18 }
 0x2f0   : > { %1453 = vlog2.f32 %v1154_v11  ;;  %s1151_s22 = smul.f32 0.005, %s1148_s19 }
 0x2fa   : > { %v1454_v22 = vpop.eup %1453 }
 0x2fb   : > { %v1156_v15 = vmul.f32 0.6931472, %v1454_v22 }
 0x2fd   : > { %1395 = vpush %v1156_v15 }
 0x32e   : > { %s1396_s21 = spop %1395 }
 0x32f   : > { %s1158_s23 = sadd.f32 %s1396_s21, %s1152_s20 }
 0x331   : > { %s1266_s24 = sadd.f32 -5.2983174, %s1158_s23 }
 0x333   : > { %s1160_s25 = ssub.f32 %s1151_s22, %s1266_s24 }
 0x335   : > { %s1161_s28 = smul.f32 -1.442695, %s1160_s25 }
 0x337   : > { %1163 = sst [smem:[#allocation6]] %s1161_s28 }
 0x338 PF: > { %p1406_p6 = scmp.eq.s32.totalorder %s1531_s27, 1  ;;  %s1455_s30 = scalar_lea.hbm %s2028_s7, 16 }
 0x339   : > { %p1456_p7 = scmp.ne.s32.totalorder %s2028_s7, %s1455_s30  ;;  %p1461_p10 = scmp.lt.u32.totalorder %s1455_s30, %s2028_s7 }
 0x33b   : > { %p1457_p8 = pnand %p1456_p7, %p1406_p6 }
 0x33d   : > { %p1458_p9 = pneg %p1457_p8 }
 0x33f   : > { %p1463_p11 = pnand %p1461_p10, %p1458_p9 }
 0x341   : > { %1466 = shalt.err (!%p1463_p11)
}
 0x342   : > { %s1481_s12 = smov [#allocation6]  }
 0x343   : > { %1402 = dma.smem_to_hbm (%p1406_p6), %s1481_s12, 16, %s2028_s7, [#allocation7]  }
 0x344   : > { %1472 = dma.done.wait (%p1406_p6), [#allocation7], 16  }
 0x345   : > { %1474 = vsyncadd (%p1406_p6), [#allocation7], 4294967280 }
 0x346   : > { %1177 = sfence }
 0x347 PF: > { %s19_s26 = sadd.s32 1, %s1477_s26  }
 0x348   : > { %p16_p12 = scmp.ge.s32.totalorder %s19_s26, 4  }
 0x34a   :  { %18 = sbr.rel (!%p16_p12) target bundleno = 3 (0x3), region = 93 }
 0x351   :  { %1183 = vsyncpa [#allocation7], 1 }
 0x352   :  { %1185 = vsyncpa [#allocation7 + $0x1], 1 }

</bundles_post_ra>
